<compile_context>
chip_gen: v6e
topology: v6e:2x2x1
jax: 0.10.0
libtpu: 0.0.40
codegen_flags: <defaults>
</compile_context>

<pallas_src>
import functools

import jax
import jax.numpy as jnp
from jax.experimental import pallas as pl
from jax.experimental.pallas import tpu as pltpu

HIDDEN = 64
NUM_CLASSES = 10
BN_EPS = 1e-5
SUBLANE = 8


def _round_up(x, m):
    return (x + m - 1) // m * m


def _classifier_kernel(x_ref, w1_ref, b1_ref, w2_ref, b2_ref, o_ref):
    """Fused forward for one batch tile (everything resident in VMEM).

    x_ref : (TB, nz)   input latent codes (natural, unpadded last dim)
    w1_ref: (nz, 64)   Linear(nz,64) weight with BN scale folded in (KN layout)
    b1_ref: (1, 64)    folded bias: b1*scale + (beta - mean*scale)
    w2_ref: (64, 10)   Linear(64,10) weight (KN layout)
    b2_ref: (1, 10)    Linear(64,10) bias
    o_ref : (TB, 10)   logits
    """
    h = jnp.dot(x_ref[...], w1_ref[...], preferred_element_type=jnp.float32)
    # folded BatchNorm1d(eval) + bias, then ReLU
    h = jnp.maximum(h + b1_ref[...], 0.0)
    o_ref[...] = (
        jnp.dot(h, w2_ref[...], preferred_element_type=jnp.float32) + b2_ref[...]
    ).astype(o_ref.dtype)


def fold_classifier_params(w1, b1, gamma, beta, run_mean, run_var, w2, b2):
    """One-time prep: fold eval-mode BatchNorm into the first Linear.

    w1: (64, nz) torch-layout, b1: (64,), BN params/stats: (64,),
    w2: (10, 64) torch-layout, b2: (10,).
    Returns (w1f (nz,64), b1f (1,64), w2t (64,10), b2r (1,10)) in float32.
    """
    # TODO(synk): BatchNorm1d is folded in eval mode (running statistics);
    # training-mode batch-statistics normalization is not computed in-kernel.
    f32 = jnp.float32
    scale = gamma.astype(f32) * jax.lax.rsqrt(run_var.astype(f32) + BN_EPS)  # (64,)
    shift = beta.astype(f32) - run_mean.astype(f32) * scale                  # (64,)
    w1f = (w1.astype(f32) * scale[:, None]).T        # (nz, 64)
    b1f = (b1.astype(f32) * scale + shift)[None, :]  # (1, 64)
    w2t = w2.astype(f32).T                           # (64, 10)
    b2r = b2.astype(f32)[None, :]                    # (1, 10)
    return w1f, b1f, w2t, b2r


@functools.partial(jax.jit, static_argnames=("block_b",))
def classifier_forward(x, w1f, b1f, w2t, b2r, *, block_b=512):
    """logits = Linear -> BN1d(eval, folded) -> ReLU -> Linear, fused in one kernel.

    x: (B, nz) ; folded params from fold_classifier_params.
    """
    B, nz = x.shape
    hidden = w1f.shape[1]
    ncls = w2t.shape[1]
    f32 = jnp.float32

    # Clamp the batch tile to a multiple of the sublane count (8).
    block_b = max(SUBLANE, (int(block_b) // SUBLANE) * SUBLANE)
    b_pad = _round_up(B, SUBLANE)
    tb = min(block_b, b_pad)
    grid = pl.cdiv(b_pad, tb)  # partial last tile is fine; OOB rows are dropped

    x_p = x.astype(f32)
    if b_pad != B:
        x_p = jnp.pad(x_p, ((0, b_pad - B), (0, 0)))

    out = pl.pallas_call(
        _classifier_kernel,
        out_shape=jax.ShapeDtypeStruct((b_pad, ncls), f32),
        grid=(grid,),
        in_specs=[
            pl.BlockSpec((tb, nz), lambda i: (i, 0)),       # x: march over batch
            pl.BlockSpec((nz, hidden), lambda i: (0, 0)),   # W1 (BN-folded), resident
            pl.BlockSpec((1, hidden), lambda i: (0, 0)),    # folded bias
            pl.BlockSpec((hidden, ncls), lambda i: (0, 0)),  # W2, resident
            pl.BlockSpec((1, ncls), lambda i: (0, 0)),      # b2
        ],
        out_specs=pl.BlockSpec((tb, ncls), lambda i: (i, 0)),
        compiler_params=pltpu.CompilerParams(
            dimension_semantics=("parallel",)  # batch axis -> both TCs on v7x
        ),
    )(x_p, w1f, b1f, w2t, b2r)

    return out if b_pad == B else out[:B]


def init_classifier_params(key, num_latent):
    """Matches initialize_weights: Linear W ~ N(0, 0.02), b = 0; BN at defaults."""
    k1, k2 = jax.random.split(key)
    w1 = 0.02 * jax.random.normal(k1, (HIDDEN, num_latent), jnp.float32)  # (out, in)
    b1 = jnp.zeros((HIDDEN,), jnp.float32)
    gamma = jnp.ones((HIDDEN,), jnp.float32)
    beta = jnp.zeros((HIDDEN,), jnp.float32)
    run_mean = jnp.zeros((HIDDEN,), jnp.float32)
    run_var = jnp.ones((HIDDEN,), jnp.float32)
    w2 = 0.02 * jax.random.normal(k2, (NUM_CLASSES, HIDDEN), jnp.float32)
    b2 = jnp.zeros((NUM_CLASSES,), jnp.float32)
    return w1, b1, gamma, beta, run_mean, run_var, w2, b2


def _reference(x, params):
    w1, b1, gamma, beta, run_mean, run_var, w2, b2 = params
    h = x @ w1.T + b1
    h = (h - run_mean) / jnp.sqrt(run_var + BN_EPS) * gamma + beta
    h = jnp.maximum(h, 0.0)
    return h @ w2.T + b2


if __name__ == "__main__":
    num_latent = 32  # args.num_latent; args.image_size is unused by forward()

    key = jax.random.PRNGKey(0)
    k_params, k_x1, k_x2 = jax.random.split(key, 3)

    params = init_classifier_params(k_params, num_latent)
    folded = fold_classifier_params(*params)  # one-time param prep (hoisted)

    # Case 1: small batch, multiple of 8 (grid = 1).
    x1 = jax.random.normal(k_x1, (8, num_latent), jnp.float32)
    y1 = classifier_forward(x1, *folded)
    jax.block_until_ready(y1)
    assert y1.shape == (8, NUM_CLASSES)
    assert jnp.allclose(y1, _reference(x1, params), atol=1e-4, rtol=1e-4)

    # Case 2: batch not a multiple of the tile (exercises row padding + partial
    # last grid block): B=20, tile 16 -> b_pad=24, grid=2 with a partial block.
    x2 = jax.random.normal(k_x2, (20, num_latent), jnp.float32)
    y2 = classifier_forward(x2, *folded, block_b=16)
    jax.block_until_ready(y2)
    assert y2.shape == (20, NUM_CLASSES)
    assert jnp.allclose(y2, _reference(x2, params), atol=1e-4, rtol=1e-4)

    print("KERNEL_OK")
</pallas_src>

<mosaic_0001>
module attributes {stable_mosaic.version = 11 : i64} {
  func.func @_classifier_kernel(%arg0: i32, %arg1: memref<8x32xf32, #tpu.memory_space<vmem>>, %arg2: memref<32x64xf32, #tpu.memory_space<vmem>>, %arg3: memref<1x64xf32, #tpu.memory_space<vmem>>, %arg4: memref<64x10xf32, #tpu.memory_space<vmem>>, %arg5: memref<1x10xf32, #tpu.memory_space<vmem>>, %arg6: memref<8x10xf32, #tpu.memory_space<vmem>>) attributes {dimension_semantics = [#tpu.dimension_semantics<parallel>], iteration_bounds = array<i64: 1>, scalar_prefetch = 0 : i64, scratch_operands = 0 : i64, tpu.core_type = #tpu.core_type<tc>, window_params = [{transform_indices = @transform_0, window_bounds = array<i64: 8, 32>}, {pipeline_mode = #tpu.pipeline_mode<synchronous>, transform_indices = @transform_1, window_bounds = array<i64: 32, 64>}, {pipeline_mode = #tpu.pipeline_mode<synchronous>, transform_indices = @transform_2, window_bounds = array<i64: 1, 64>}, {pipeline_mode = #tpu.pipeline_mode<synchronous>, transform_indices = @transform_3, window_bounds = array<i64: 64, 10>}, {pipeline_mode = #tpu.pipeline_mode<synchronous>, transform_indices = @transform_4, window_bounds = array<i64: 1, 10>}, {transform_indices = @transform_5, window_bounds = array<i64: 8, 10>}]} {
    %c0 = arith.constant 0 : index
    %c0_0 = arith.constant 0 : index
    %0 = vector.load %arg1[%c0, %c0_0] : memref<8x32xf32, #tpu.memory_space<vmem>>, vector<8x32xf32>
    %c0_1 = arith.constant 0 : index
    %c0_2 = arith.constant 0 : index
    %1 = vector.load %arg2[%c0_1, %c0_2] : memref<32x64xf32, #tpu.memory_space<vmem>>, vector<32x64xf32>
    %cst = arith.constant dense<0.000000e+00> : vector<8x64xf32>
    %2 = tpu.matmul %0, %1, %cst {dimension_numbers = #tpu.dot_dimension_numbers<[1], [0], [0], [1], [0, 0, 1, 1], [], []>} : vector<8x32xf32>, vector<32x64xf32>, vector<8x64xf32> -> vector<8x64xf32>
    %c0_3 = arith.constant 0 : index
    %c0_4 = arith.constant 0 : index
    %3 = vector.load %arg3[%c0_3, %c0_4] : memref<1x64xf32, #tpu.memory_space<vmem>>, vector<1x64xf32>
    %4 = vector.broadcast %3 : vector<1x64xf32> to vector<8x64xf32>
    %5 = arith.addf %2, %4 : vector<8x64xf32>
    %cst_5 = arith.constant 0.000000e+00 : f32
    %6 = vector.broadcast %cst_5 : f32 to vector<8x64xf32>
    %7 = arith.maximumf %5, %6 : vector<8x64xf32>
    %c0_6 = arith.constant 0 : index
    %c0_7 = arith.constant 0 : index
    %8 = vector.load %arg4[%c0_6, %c0_7] : memref<64x10xf32, #tpu.memory_space<vmem>>, vector<64x10xf32>
    %cst_8 = arith.constant dense<0.000000e+00> : vector<8x10xf32>
    %9 = tpu.matmul %7, %8, %cst_8 {dimension_numbers = #tpu.dot_dimension_numbers<[1], [0], [0], [1], [0, 0, 1, 1], [], []>} : vector<8x64xf32>, vector<64x10xf32>, vector<8x10xf32> -> vector<8x10xf32>
    %c0_9 = arith.constant 0 : index
    %c0_10 = arith.constant 0 : index
    %10 = vector.load %arg5[%c0_9, %c0_10] : memref<1x10xf32, #tpu.memory_space<vmem>>, vector<1x10xf32>
    %11 = vector.broadcast %10 : vector<1x10xf32> to vector<8x10xf32>
    %12 = arith.addf %9, %11 : vector<8x10xf32>
    %c0_11 = arith.constant 0 : index
    %c0_12 = arith.constant 0 : index
    %13 = vector.load %arg6[%c0_11, %c0_12] : memref<8x10xf32, #tpu.memory_space<vmem>>, vector<8x10xf32>
    tpu.vector_store %arg6[%c0_11, %c0_12], %12 {strides = array<i32>} : memref<8x10xf32, #tpu.memory_space<vmem>>, vector<8x10xf32>,
    return
  }
  func.func @transform_0(%arg0: i32) -> (i32, i32) {
    %c0_i32 = arith.constant 0 : i32
    %c0_i32_0 = arith.constant 0 : i32
    return %arg0, %c0_i32 : i32, i32
  }
  func.func @transform_1(%arg0: i32) -> (i32, i32) {
    %c0_i32 = arith.constant 0 : i32
    %c0_i32_0 = arith.constant 0 : i32
    %c0_i32_1 = arith.constant 0 : i32
    return %c0_i32, %c0_i32_0 : i32, i32
  }
  func.func @transform_2(%arg0: i32) -> (i32, i32) {
    %c0_i32 = arith.constant 0 : i32
    %c0_i32_0 = arith.constant 0 : i32
    %c0_i32_1 = arith.constant 0 : i32
    return %c0_i32, %c0_i32_0 : i32, i32
  }
  func.func @transform_3(%arg0: i32) -> (i32, i32) {
    %c0_i32 = arith.constant 0 : i32
    %c0_i32_0 = arith.constant 0 : i32
    %c0_i32_1 = arith.constant 0 : i32
    return %c0_i32, %c0_i32_0 : i32, i32
  }
  func.func @transform_4(%arg0: i32) -> (i32, i32) {
    %c0_i32 = arith.constant 0 : i32
    %c0_i32_0 = arith.constant 0 : i32
    %c0_i32_1 = arith.constant 0 : i32
    return %c0_i32, %c0_i32_0 : i32, i32
  }
  func.func @transform_5(%arg0: i32) -> (i32, i32) {
    %c0_i32 = arith.constant 0 : i32
    %c0_i32_0 = arith.constant 0 : i32
    return %arg0, %c0_i32 : i32, i32
  }
}

</mosaic_0001>

<bundles_post_ra>
// kernel: classifier_forward.1
= control target key start
LH: loop header
LB: loop body
LE: loop exit
PB: predicated region body
PF: predicated region fallthrough
CT: control target
= control target key end

     0   :  { %v286_v1 = vmov 0.0   ;;  %vm287_vm0 = vmmov 0   ;;  %s369_s0 = inlined_call_operand.vmem [shape: f32[8,32], index: 0, kind: input, shape index: {}]   ;;  %s370_s1 = inlined_call_operand.vmem [shape: f32[32,64], index: 1, kind: input, shape index: {}]   ;;  %s371_s2 = inlined_call_operand.vmem [shape: f32[1,64], index: 2, kind: input, shape index: {}]   ;;  %s372_s3 = inlined_call_operand.vmem [shape: f32[64,10], index: 3, kind: input, shape index: {}]   ;;  %s373_s4 = inlined_call_operand.vmem [shape: f32[1,10], index: 4, kind: input, shape index: {}]   ;;  %s374_s5 = inlined_call_operand.hbm [shape: f32[8,10], index: 5, kind: output, shape index: {}]  }
   0x1   :  { %v25_v0 = vld [vmem:[%s370_s1 + $0x18] sm:$0xff]  ;;  %231 = vmatprep.subr.mxu0 %v286_v1  ;;  %v24_v2 = vld [vmem:[%s370_s1 + $0x10] sm:$0xff]  ;;  %239 = vmatprep.mubr.msk.f32.mxu0 %vm287_vm0, %v286_v1  ;;  %v23_v5 = vld [vmem:[%s370_s1 + $0x8] sm:$0xff] }
   0x2   :  { %v115_v3 = vld [vmem:[%s372_s3 + $0x38] sm:$0xff]  ;;  %232 = vmatpush3.msra.mxu0 %v25_v0  ;;  %242 = vmatprep.subr.mxu1 %v286_v1  ;;  %v114_v4 = vld [vmem:[%s372_s3 + $0x30] sm:$0xff] }
   0x3   :  { %233 = vmatprep.subr.mxu0 %v286_v1  ;;  %243 = vmatpush3.msra.mxu1 %v115_v3 }
   0x4   :  { %10 = vsyncpa [#allocation3], 0  ;;  %234 = vmatpush3.msra.mxu0 %v24_v2  ;;  %244 = vmatprep.subr.mxu1 %v286_v1  ;;  %v113_v6 = vld [vmem:[%s372_s3 + $0x28] sm:$0xff]  ;;  %v22_v7 = vld [vmem:[%s370_s1] sm:$0xff]  ;;  %vm33_vm1 = vcmask 261120   ;;  %vm123_vm2 = vcmask 523264  }
   0x5   :  { %235 = vmatprep.subr.mxu0 %v286_v1  ;;  %245 = vmatpush3.msra.mxu1 %v114_v4  ;;  %v21_v8 = vld [vmem:[%s369_s0] sm:$0xff]  ;;  %v111_v10 = vld [vmem:[%s372_s3 + $0x18] sm:$0xff]  ;;  %v110_v11 = vld [vmem:[%s372_s3 + $0x10] sm:$0xff]  ;;  %s288_s21 = smov [#allocation2]   ;;  %vm197_vm3 = vcmask 80896  }
   0x6   :  { %236 = vmatpush3.msra.mxu0 %v23_v5  ;;  %246 = vmatprep.subr.mxu1 %v286_v1  ;;  %v112_v9 = vld [vmem:[%s372_s3 + $0x20] sm:$0xff]  ;;  %v109_v12 = vld [vmem:[%s372_s3 + $0x8] sm:$0xff]  ;;  %s205_s22 = sshll.u32 %s288_s21, 4  ;;  %s206_s22 = int_to_ptr.vmem [resolvable:$true] %s205_s22 }
   0x7   :  { %237 = vmatprep.subr.mxu0 %v286_v1  ;;  %247 = vmatpush3.msra.mxu1 %v113_v6  ;;  %v108_v13 = vld [vmem:[%s372_s3] sm:$0xff]  ;;  %s264_s3 = scalar_lea.vmem %s206_s22, 128  ;;  %p269_p1 = scmp.lt.s32.totalorder %s206_s22, %s206_s22 }
   0x8   :  { %238 = vmatpush3.msra.mxu0 %v22_v7  ;;  %248 = vmatprep.subr.mxu1 %v286_v1  ;;  %v213_v14 = vld [vmem:[%s371_s2] ss:$0 sm:$0xff]  ;;  %p265_p0 = scmp.ne.s32.totalorder %s206_s22, %s264_s3  ;;  %p270_p2 = scmp.lt.s32.totalorder %s264_s3, %s264_s3 }
   0x9   :  { %240 = vmatmul.mubr.msk.f32.vlgmr.msra.gmra.mxu0 %vm33_vm1, %v21_v8  ;;  %249 = vmatpush3.msra.mxu1 %v112_v9  ;;  %v215_v19 = vld [vmem:[%s373_s4] ss:$0 sm:$0xff] }
   0xa   :  { %250 = vmatprep.subr.mxu1 %v286_v1  ;;  %258 = vmatprep.mubr.msk.f32.mxu1 %vm287_vm0, %v286_v1  ;;  %p271_p3 = por %p270_p2, %p269_p1 }
   0xb   :  { %251 = vmatpush3.msra.mxu1 %v111_v10 }
   0xc   :  { %252 = vmatprep.subr.mxu1 %v286_v1  ;;  %p272_p4 = pnand %p271_p3, %p265_p0 }
   0xd   :  { %253 = vmatpush3.msra.mxu1 %v110_v11 }
   0xe   :  { %254 = vmatprep.subr.mxu1 %v286_v1 }
   0xf   :  { %255 = vmatpush3.msra.mxu1 %v109_v12 }
  0x10   :  { %256 = vmatprep.subr.mxu1 %v286_v1 }
  0x11   :  { %257 = vmatpush3.msra.mxu1 %v108_v13 }
  0xc9   :  { %v103_v15 = vpop.f32.mrf.mxu0 }
  0xca   :  { %v104_v16 = vadd.f32 %v213_v14, %v103_v15 }
  0xcb   :  { %v241_v17 = vpop.f32.mrf.mxu0 }
  0xcc   :  { %v107_v18 = vmax.f32 %v104_v16, 0.0 }
  0xce   :  { %259 = vmatmul.mubr.msk.f32.vlgmr.msra.gmra.mxu1 %vm123_vm2, %v107_v18 }
 0x18e   :  { %v193_v20 = vpop.f32.mrf.mxu1 }
 0x18f   :  { %v194_v21 = vadd.f32 %v215_v19, %v193_v20 }
 0x190   :  { %v260_v22 = vpop.f32.mrf.mxu1 }
 0x191   :  { %198 = vst.msk [vmem:[#allocation2] sm:$0xff] %vm197_vm3, %v194_v21 }
 0x192   :  { %275 = shalt.err (!%p272_p4)
}
 0x193   :  { %208 = dma.vmem_to_hbm [thread:$0]  %s206_s22, 128, %s374_s5, [#allocation3]  }
 0x194   :  { %284 = dma.done.wait [#allocation3], 128  }
 0x195   :  { %285 = vsyncadd [#allocation3], 4294967168 }
 0x196   :  { %212 = vsyncpa [#allocation3], 1 }

</bundles_post_ra>
